<compile_context>
chip_gen: v6e
topology: v6e:2x2x1
jax: 0.10.0
libtpu: 0.0.40
codegen_flags: <defaults>
</compile_context>

<pallas_src>
import functools

import jax
import jax.numpy as jnp
from jax.experimental import pallas as pl
from jax.experimental.pallas import tpu as pltpu


def _lncc_kernel(bh5_ref, bws_ref, i_ref, j_ref, out_ref, acc_ref, *, H, total_elems):
    g = pl.program_id(0)

    @pl.when(g == 0)
    def _():
        acc_ref[...] = jnp.zeros_like(acc_ref)

    # Normalize to [0, 1] like the PyTorch module (I / 255.0) -- kept in-kernel.
    inv255 = 1.0 / 255.0
    I = i_ref[0] * inv255          # (H, P*W)
    J = j_ref[0] * inv255

    # Stack the five fields along sublanes -> (5H, P*W); the whole separable
    # zero-padded box *mean* then costs exactly two large matmuls.  The
    # 1/window**2 factor is folded into BWs on the host.
    fields = jnp.concatenate([I, J, I * I, J * J, I * J], axis=0)
    row_sum = jnp.dot(fields, bws_ref[...], preferred_element_type=jnp.float32)
    pooled = jnp.dot(bh5_ref[...], row_sum, preferred_element_type=jnp.float32)

    Im = pooled[0 * H:1 * H]
    Jm = pooled[1 * H:2 * H]
    Ipp = pooled[2 * H:3 * H]
    Jpp = pooled[3 * H:4 * H]
    IJp = pooled[4 * H:5 * H]

    eps = 1e-5
    I_var = Ipp - Im * Im
    J_var = Jpp - Jm * Jm
    # sqrt(a)*sqrt(b) -> sqrt(a*b): one EUP sqrt instead of two.
    denom = jnp.sqrt((I_var + eps) * (J_var + eps)) + eps
    ncc = (IJp - Im * Jm) / denom

    # Lane-dense partial accumulation; no cross-lane reduce / masked store here.
    acc_ref[...] += ncc

    @pl.when(g == pl.num_programs(0) - 1)
    def _():
        total = jnp.sum(acc_ref[...], keepdims=True)          # (1, 1)
        loss = -(total * (1.0 / float(total_elems)))          # -mean(ncc)
        out_ref[...] = (loss + 1.0) * 0.5                     # (loss + 1) / 2


def _choose_pack(nc, h, w):
    """Largest divisor P of NC such that the packed (H, P*W) slab is lane-dense
    but stays well under the default scoped-VMEM limits (16 MiB on v5e)."""
    best = 1
    for p in range(1, nc + 1):
        if nc % p:
            continue
        lanes = p * w
        tile_bytes = h * lanes * 4
        if lanes <= 512 and tile_bytes <= 512 * 1024:
            best = p
    return best


def lncc_loss(I, J, window_size=7):
    """JAX/Pallas equivalent of LNCC.forward(I, J).  I, J: (N, C, H, W)."""
    assert I.shape == J.shape
    N, C, H, W = I.shape
    pad = window_size // 2
    NC = N * C

    P = _choose_pack(NC, H, W)
    G = NC // P
    PW = P * W

    def pack(x):
        # (N,C,H,W) -> (G,P,H,W) -> (G,H,P,W) -> (G,H,P*W): lane-dense slabs.
        x = x.astype(jnp.float32).reshape(G, P, H, W)
        return jnp.transpose(x, (0, 2, 1, 3)).reshape(G, H, PW)

    I2 = pack(I)
    J2 = pack(J)

    # Banded (box-filter) matrices for the separable zero-padded window sum.
    rh = jnp.arange(H)
    BH = (jnp.abs(rh[:, None] - rh[None, :]) <= pad).astype(jnp.float32)   # (H, H)
    rw = jnp.arange(W)
    BW = (jnp.abs(rw[:, None] - rw[None, :]) <= pad).astype(jnp.float32)   # (W, W)

    inv_win = 1.0 / float(window_size * window_size)
    # Block-diagonal: one W-band per packed plane, 1/window**2 folded in.
    BWs = jnp.kron(jnp.eye(P, dtype=jnp.float32), BW) * inv_win            # (PW, PW)
    # Block-diagonal: one H-band per stacked field (I, J, I^2, J^2, I*J).
    BH5 = jnp.kron(jnp.eye(5, dtype=jnp.float32), BH)                      # (5H, 5H)

    kernel = functools.partial(_lncc_kernel, H=H, total_elems=NC * H * W)

    out = pl.pallas_call(
        kernel,
        out_shape=jax.ShapeDtypeStruct((1, 1), jnp.float32),
        grid_spec=pltpu.PrefetchScalarGridSpec(
            num_scalar_prefetch=0,
            grid=(G,),
            in_specs=[
                pl.BlockSpec((5 * H, 5 * H), lambda g: (0, 0)),   # BH5 (shared)
                pl.BlockSpec((PW, PW), lambda g: (0, 0)),         # BWs (shared)
                pl.BlockSpec((1, H, PW), lambda g: (g, 0, 0)),    # packed I slab
                pl.BlockSpec((1, H, PW), lambda g: (g, 0, 0)),    # packed J slab
            ],
            out_specs=pl.BlockSpec((1, 1), lambda g: (0, 0)),     # scalar result
            scratch_shapes=[pltpu.VMEM((H, PW), jnp.float32)],    # ncc accumulator
        ),
        compiler_params=pltpu.CompilerParams(
            dimension_semantics=("arbitrary",),   # reduction over plane groups
        ),
    )(BH5, BWs, I2, J2)

    # TODO(synk): on v7x, split the grid into (2, G//2) with a per-core
    # accumulator row to use both TensorCores; for large H/W switch the pool to
    # a pltpu.roll-based 7-tap separable sum instead of dense band matmuls.
    return out[0, 0]


if __name__ == "__main__":
    key = jax.random.PRNGKey(0)
    k1, k2 = jax.random.split(key)
    # Small image-like inputs in [0, 255], as the module divides by 255.
    I = jax.random.uniform(k1, (2, 4, 16, 16), minval=0.0, maxval=255.0)
    J = jax.random.uniform(k2, (2, 4, 16, 16), minval=0.0, maxval=255.0)

    loss = lncc_loss(I, J, window_size=7)
    jax.block_until_ready(loss)

    # Pure-JAX reference check (avg_pool2d with count_include_pad=True).
    def ref_lncc(I, J, window_size=7):
        pad = window_size // 2
        Inorm = I / 255.0
        Jnorm = J / 255.0

        def pool(x):
            xp = jnp.pad(x, ((0, 0), (0, 0), (pad, pad), (pad, pad)))
            s = jax.lax.reduce_window(
                xp, 0.0, jax.lax.add,
                (1, 1, window_size, window_size), (1, 1, 1, 1), "VALID")
            return s / float(window_size * window_size)

        Im, Jm = pool(Inorm), pool(Jnorm)
        Iv = pool(Inorm * Inorm) - Im * Im
        Jv = pool(Jnorm * Jnorm) - Jm * Jm
        Is, Js = jnp.sqrt(Iv + 1e-5), jnp.sqrt(Jv + 1e-5)
        ncc = (pool(Inorm * Jnorm) - Im * Jm) / (Is * Js + 1e-5)
        loss = -jnp.mean(ncc)
        return (loss + 1.0) / 2.0

    ref = ref_lncc(I, J)
    assert jnp.allclose(loss, ref, atol=1e-5, rtol=1e-5), (loss, ref)

    print("KERNEL_OK")
</pallas_src>

<mosaic_0001>
module attributes {stable_mosaic.version = 11 : i64} {
  func.func @_lncc_kernel(%arg0: i32, %arg1: memref<80x80xf32, #tpu.memory_space<vmem>>, %arg2: memref<128x128xf32, #tpu.memory_space<vmem>>, %arg3: memref<1x16x128xf32, #tpu.memory_space<vmem>>, %arg4: memref<1x16x128xf32, #tpu.memory_space<vmem>>, %arg5: memref<1x1xf32, #tpu.memory_space<vmem>>, %arg6: memref<16x128xf32, #tpu.memory_space<vmem>>) attributes {dimension_semantics = [#tpu.dimension_semantics<arbitrary>], iteration_bounds = array<i64: 1>, scalar_prefetch = 0 : i64, scratch_operands = 1 : i64, tpu.core_type = #tpu.core_type<tc>, window_params = [{pipeline_mode = #tpu.pipeline_mode<synchronous>, transform_indices = @transform_0, window_bounds = array<i64: 80, 80>}, {pipeline_mode = #tpu.pipeline_mode<synchronous>, transform_indices = @transform_1, window_bounds = array<i64: 128, 128>}, {transform_indices = @transform_2, window_bounds = array<i64: 1, 16, 128>}, {transform_indices = @transform_3, window_bounds = array<i64: 1, 16, 128>}, {pipeline_mode = #tpu.pipeline_mode<synchronous>, transform_indices = @transform_4, window_bounds = array<i64: 1, 1>}]} {
    %c0_i32 = arith.constant 0 : i32
    %0 = arith.cmpi eq, %arg0, %c0_i32 : i32
    %1 = arith.extui %0 : i1 to i32
    %c0_i32_0 = arith.constant 0 : i32
    %2 = arith.cmpi ne, %1, %c0_i32_0 : i32
    scf.if %2 {
      %cst_22 = arith.constant 0.000000e+00 : f32
      %45 = vector.broadcast %cst_22 : f32 to vector<16x128xf32>
      %c0_23 = arith.constant 0 : index
      %c0_24 = arith.constant 0 : index
      %46 = vector.load %arg6[%c0_23, %c0_24] : memref<16x128xf32, #tpu.memory_space<vmem>>, vector<16x128xf32>
      tpu.vector_store %arg6[%c0_23, %c0_24], %45 {strides = array<i32>} : memref<16x128xf32, #tpu.memory_space<vmem>>, vector<16x128xf32>,
    } else {
    }
    %c0 = arith.constant 0 : index
    %c0_1 = arith.constant 0 : index
    %c0_2 = arith.constant 0 : index
    %3 = vector.load %arg3[%c0, %c0_1, %c0_2] : memref<1x16x128xf32, #tpu.memory_space<vmem>>, vector<1x16x128xf32>
    %4 = vector.shape_cast %3 : vector<1x16x128xf32> to vector<16x128xf32>
    %cst = arith.constant 0.00392156886 : f32
    %5 = vector.broadcast %cst : f32 to vector<16x128xf32>
    %6 = arith.mulf %4, %5 : vector<16x128xf32>
    %c0_3 = arith.constant 0 : index
    %c0_4 = arith.constant 0 : index
    %c0_5 = arith.constant 0 : index
    %7 = vector.load %arg4[%c0_3, %c0_4, %c0_5] : memref<1x16x128xf32, #tpu.memory_space<vmem>>, vector<1x16x128xf32>
    %8 = vector.shape_cast %7 : vector<1x16x128xf32> to vector<16x128xf32>
    %cst_6 = arith.constant 0.00392156886 : f32
    %9 = vector.broadcast %cst_6 : f32 to vector<16x128xf32>
    %10 = arith.mulf %8, %9 : vector<16x128xf32>
    %11 = arith.mulf %6, %6 : vector<16x128xf32>
    %12 = arith.mulf %10, %10 : vector<16x128xf32>
    %13 = arith.mulf %6, %10 : vector<16x128xf32>
    %14 = tpu.concatenate %6, %10, %11, %12, %13 in 0 : vector<16x128xf32>, vector<16x128xf32>, vector<16x128xf32>, vector<16x128xf32>, vector<16x128xf32> -> vector<80x128xf32>
    %c0_7 = arith.constant 0 : index
    %c0_8 = arith.constant 0 : index
    %15 = vector.load %arg2[%c0_7, %c0_8] : memref<128x128xf32, #tpu.memory_space<vmem>>, vector<128x128xf32>
    %cst_9 = arith.constant dense<0.000000e+00> : vector<80x128xf32>
    %16 = tpu.matmul %14, %15, %cst_9 {dimension_numbers = #tpu.dot_dimension_numbers<[1], [0], [0], [1], [0, 0, 1, 1], [], []>} : vector<80x128xf32>, vector<128x128xf32>, vector<80x128xf32> -> vector<80x128xf32>
    %c0_10 = arith.constant 0 : index
    %c0_11 = arith.constant 0 : index
    %17 = vector.load %arg1[%c0_10, %c0_11] : memref<80x80xf32, #tpu.memory_space<vmem>>, vector<80x80xf32>
    %cst_12 = arith.constant dense<0.000000e+00> : vector<80x128xf32>
    %18 = tpu.matmul %17, %16, %cst_12 {dimension_numbers = #tpu.dot_dimension_numbers<[1], [0], [0], [1], [0, 0, 1, 1], [], []>} : vector<80x80xf32>, vector<80x128xf32>, vector<80x128xf32> -> vector<80x128xf32>
    %19 = vector.extract_strided_slice %18 {offsets = [0, 0], sizes = [16, 128], strides = [1, 1]} : vector<80x128xf32> to vector<16x128xf32>
    %20 = vector.extract_strided_slice %18 {offsets = [16, 0], sizes = [16, 128], strides = [1, 1]} : vector<80x128xf32> to vector<16x128xf32>
    %21 = vector.extract_strided_slice %18 {offsets = [32, 0], sizes = [16, 128], strides = [1, 1]} : vector<80x128xf32> to vector<16x128xf32>
    %22 = vector.extract_strided_slice %18 {offsets = [48, 0], sizes = [16, 128], strides = [1, 1]} : vector<80x128xf32> to vector<16x128xf32>
    %23 = vector.extract_strided_slice %18 {offsets = [64, 0], sizes = [16, 128], strides = [1, 1]} : vector<80x128xf32> to vector<16x128xf32>
    %24 = arith.mulf %19, %19 : vector<16x128xf32>
    %25 = arith.subf %21, %24 : vector<16x128xf32>
    %26 = arith.mulf %20, %20 : vector<16x128xf32>
    %27 = arith.subf %22, %26 : vector<16x128xf32>
    %cst_13 = arith.constant 9.99999974E-6 : f32
    %28 = vector.broadcast %cst_13 : f32 to vector<16x128xf32>
    %29 = arith.addf %25, %28 : vector<16x128xf32>
    %cst_14 = arith.constant 9.99999974E-6 : f32
    %30 = vector.broadcast %cst_14 : f32 to vector<16x128xf32>
    %31 = arith.addf %27, %30 : vector<16x128xf32>
    %32 = arith.mulf %29, %31 : vector<16x128xf32>
    %33 = math.sqrt %32 : vector<16x128xf32>
    %cst_15 = arith.constant 9.99999974E-6 : f32
    %34 = vector.broadcast %cst_15 : f32 to vector<16x128xf32>
    %35 = arith.addf %33, %34 : vector<16x128xf32>
    %36 = arith.mulf %19, %20 : vector<16x128xf32>
    %37 = arith.subf %23, %36 : vector<16x128xf32>
    %38 = arith.divf %37, %35 : vector<16x128xf32>
    %c0_16 = arith.constant 0 : index
    %c0_17 = arith.constant 0 : index
    %39 = vector.load %arg6[%c0_16, %c0_17] : memref<16x128xf32, #tpu.memory_space<vmem>>, vector<16x128xf32>
    %40 = arith.addf %39, %38 : vector<16x128xf32>
    %c0_18 = arith.constant 0 : index
    %c0_19 = arith.constant 0 : index
    %41 = vector.load %arg6[%c0_18, %c0_19] : memref<16x128xf32, #tpu.memory_space<vmem>>, vector<16x128xf32>
    tpu.vector_store %arg6[%c0_18, %c0_19], %40 {strides = array<i32>} : memref<16x128xf32, #tpu.memory_space<vmem>>, vector<16x128xf32>,
    %c0_i32_20 = arith.constant 0 : i32
    %42 = arith.cmpi eq, %arg0, %c0_i32_20 : i32
    %43 = arith.extui %42 : i1 to i32
    %c0_i32_21 = arith.constant 0 : i32
    %44 = arith.cmpi ne, %43, %c0_i32_21 : i32
    scf.if %44 {
      %c0_22 = arith.constant 0 : index
      %c0_23 = arith.constant 0 : index
      %45 = vector.load %arg6[%c0_22, %c0_23] : memref<16x128xf32, #tpu.memory_space<vmem>>, vector<16x128xf32>
      %46 = vector.shape_cast %45 : vector<16x128xf32> to vector<1x16x128xf32>
      %cst_24 = arith.constant dense<0.000000e+00> : vector<1xf32>
      %47 = vector.multi_reduction <add>, %46, %cst_24 [1, 2] : vector<1x16x128xf32> to vector<1xf32>
      %48 = vector.shape_cast %47 : vector<1xf32> to vector<1x1x1xf32>
      %49 = vector.extract %48[0, 0, 0] : f32 from vector<1x1x1xf32>
      %50 = vector.broadcast %49 : f32 to vector<1x1xf32>
      %cst_25 = arith.constant 4.8828125E-4 : f32
      %51 = vector.broadcast %cst_25 : f32 to vector<1x1xf32>
      %52 = arith.mulf %50, %51 : vector<1x1xf32>
      %cst_26 = arith.constant 0.000000e+00 : f32
      %53 = vector.broadcast %cst_26 : f32 to vector<1x1xf32>
      %54 = arith.subf %53, %52 : vector<1x1xf32>
      %cst_27 = arith.constant 1.000000e+00 : f32
      %55 = vector.broadcast %cst_27 : f32 to vector<1x1xf32>
      %56 = arith.addf %54, %55 : vector<1x1xf32>
      %cst_28 = arith.constant 5.000000e-01 : f32
      %57 = vector.broadcast %cst_28 : f32 to vector<1x1xf32>
      %58 = arith.mulf %56, %57 : vector<1x1xf32>
      %c0_29 = arith.constant 0 : index
      %c0_30 = arith.constant 0 : index
      %59 = vector.load %arg5[%c0_29, %c0_30] : memref<1x1xf32, #tpu.memory_space<vmem>>, vector<1x1xf32>
      tpu.vector_store %arg5[%c0_29, %c0_30], %58 {strides = array<i32>} : memref<1x1xf32, #tpu.memory_space<vmem>>, vector<1x1xf32>,
    } else {
    }
    return
  }
  func.func @transform_0(%arg0: i32) -> (i32, i32) {
    %c0_i32 = arith.constant 0 : i32
    %c0_i32_0 = arith.constant 0 : i32
    %c0_i32_1 = arith.constant 0 : i32
    return %c0_i32, %c0_i32_0 : i32, i32
  }
  func.func @transform_1(%arg0: i32) -> (i32, i32) {
    %c0_i32 = arith.constant 0 : i32
    %c0_i32_0 = arith.constant 0 : i32
    %c0_i32_1 = arith.constant 0 : i32
    return %c0_i32, %c0_i32_0 : i32, i32
  }
  func.func @transform_2(%arg0: i32) -> (i32, i32, i32) {
    %c0_i32 = arith.constant 0 : i32
    %c0_i32_0 = arith.constant 0 : i32
    %c0_i32_1 = arith.constant 0 : i32
    return %arg0, %c0_i32, %c0_i32_0 : i32, i32, i32
  }
  func.func @transform_3(%arg0: i32) -> (i32, i32, i32) {
    %c0_i32 = arith.constant 0 : i32
    %c0_i32_0 = arith.constant 0 : i32
    %c0_i32_1 = arith.constant 0 : i32
    return %arg0, %c0_i32, %c0_i32_0 : i32, i32, i32
  }
  func.func @transform_4(%arg0: i32) -> (i32, i32) {
    %c0_i32 = arith.constant 0 : i32
    %c0_i32_0 = arith.constant 0 : i32
    %c0_i32_1 = arith.constant 0 : i32
    return %c0_i32, %c0_i32_0 : i32, i32
  }
}

</mosaic_0001>

<bundles_post_ra>
// kernel: tpu_custom_call.1
= control target key start
LH: loop header
LB: loop body
LE: loop exit
PB: predicated region body
PF: predicated region fallthrough
CT: control target
= control target key end

     0   :  { %9 = vsyncpa [#allocation4], 0  ;;  %s795_s0 = inlined_call_operand.hbm [shape: f32[80,80], index: 0, kind: input, shape index: {}]   ;;  %s796_s1 = inlined_call_operand.hbm [shape: f32[128,128], index: 1, kind: input, shape index: {}]   ;;  %s797_s2 = inlined_call_operand.hbm [shape: f32[1,16,128], index: 2, kind: input, shape index: {}]   ;;  %s798_s3 = inlined_call_operand.hbm [shape: f32[1,16,128], index: 3, kind: input, shape index: {}]   ;;  %s799_s4 = inlined_call_operand.hbm [shape: f32[1,1], index: 4, kind: output, shape index: {}]  }
   0x1   :  { %10 = vsyncpa [#allocation7], 0 }
   0x2   :  { %11 = vsyncpa [#allocation10], 0 }
   0x3   :  { %12 = vsyncpa [#allocation5], 0  ;;  %s726_s15 = smov [#allocation6]   ;;  %s727_s17 = smov [#allocation3]  }
   0x4   :  { %s30_s16 = sshll.u32 %s726_s15, 4  ;;  %s18_s18 = sshll.u32 %s727_s17, 4  ;;  %s31_s16 = int_to_ptr.vmem [resolvable:$true] %s30_s16  ;;  %s19_s18 = int_to_ptr.vmem [resolvable:$true] %s18_s18 }
   0x5   :  { %s626_s19 = scalar_lea.vmem %s31_s16, 2048  ;;  %p631_p1 = scmp.lt.s32.totalorder %s31_s16, %s31_s16 }
   0x6   :  { %p627_p0 = scmp.ne.s32.totalorder %s31_s16, %s626_s19  ;;  %p632_p2 = scmp.lt.s32.totalorder %s626_s19, %s626_s19 }
   0x8   :  { %p633_p3 = por %p632_p2, %p631_p1 }
   0xa   :  { %p634_p4 = pnand %p633_p3, %p627_p0 }
   0xc   :  { %637 = shalt.err (!%p634_p4)
}
   0xd   :  { %s728_s20 = smov 128   ;;  %s729_s21 = smov 8  }
   0xe   :  { %36 = dma.hbm_to_vmem [thread:$0]  %s796_s1, 2048, %s31_s16, [#allocation7], %s728_s20, %s728_s20, %s729_s21  }
   0xf   :  { %s646_s24 = scalar_lea.vmem %s19_s18, 1280  ;;  %p651_p6 = scmp.lt.s32.totalorder %s19_s18, %s19_s18 }
  0x10   :  { %p647_p5 = scmp.ne.s32.totalorder %s19_s18, %s646_s24  ;;  %p652_p7 = scmp.lt.s32.totalorder %s646_s24, %s646_s24 }
  0x12   :  { %p653_p8 = por %p652_p7, %p651_p6 }
  0x14   :  { %p654_p9 = pnand %p653_p8, %p647_p5 }
  0x16   :  { %657 = shalt.err (!%p654_p9)
}
  0x17   :  { %24 = dma.hbm_to_vmem [thread:$0]  %s795_s0, 1280, %s19_s18, [#allocation4], %s728_s20, %s728_s20, %s729_s21  }
  0x18   :  { %s730_s27 = smov [#allocation8]   ;;  %s731_s29 = smov [#allocation9]  }
  0x19   :  { %s42_s28 = sshll.u32 %s730_s27, 4  ;;  %s54_s30 = sshll.u32 %s731_s29, 4  ;;  %s43_s28 = int_to_ptr.vmem [resolvable:$true] %s42_s28  ;;  %s55_s30 = int_to_ptr.vmem [resolvable:$true] %s54_s30 }
  0x1a   :  { %s666_s1 = scalar_lea.vmem %s43_s28, 256  ;;  %p671_p11 = scmp.lt.s32.totalorder %s43_s28, %s43_s28 }
  0x1b   :  { %p667_p10 = scmp.ne.s32.totalorder %s43_s28, %s666_s1  ;;  %p672_p12 = scmp.lt.s32.totalorder %s666_s1, %s666_s1 }
  0x1d   :  { %p673_p13 = por %p672_p12, %p671_p11 }
  0x1f   :  { %p674_p0 = pnand %p673_p13, %p667_p10 }
  0x21   :  { %677 = shalt.err (!%p674_p0)
}
  0x22   :  { %48 = dma.hbm_to_vmem [thread:$0]  %s797_s2, 256, %s43_s28, [#allocation7], %s728_s20, %s728_s20, %s729_s21  }
  0x23   :  { %s686_s0 = scalar_lea.vmem %s55_s30, 256  ;;  %p691_p2 = scmp.lt.s32.totalorder %s55_s30, %s55_s30 }
  0x24   :  { %p687_p1 = scmp.ne.s32.totalorder %s55_s30, %s686_s0  ;;  %p692_p3 = scmp.lt.s32.totalorder %s686_s0, %s686_s0 }
  0x26   :  { %p693_p4 = por %p692_p3, %p691_p2 }
  0x28   :  { %p694_p5 = pnand %p693_p4, %p687_p1 }
  0x2a   :  { %697 = shalt.err (!%p694_p5)
}
  0x2b   :  { %60 = dma.hbm_to_vmem [thread:$0]  %s798_s3, 256, %s55_s30, [#allocation10], %s728_s20, %s728_s20, %s729_s21  }
  0x2c   :  { %718 = dma.done.wait [#allocation4], 1280  }
  0x2d   :  { %719 = vsyncadd [#allocation4], 4294966016 }
  0x2e   :  { %720 = dma.done.wait [#allocation7], 2304  }
  0x2f   :  { %721 = vsyncadd [#allocation7], 4294964992 }
  0x30   :  { %722 = dma.done.wait [#allocation10], 256  }
  0x31   :  { %723 = vsyncadd [#allocation10], 4294967040  ;;  %v108_v0 = vld [vmem:[#allocation6 + $0x78] sm:$0xff]  ;;  %v107_v1 = vld [vmem:[#allocation6 + $0x70] sm:$0xff]  ;;  %vm234_vm0 = vcmask 654336   ;;  %s732_s3 = smov [#allocation11]  }
  0x32   :  { %519 = vmatprep.subr.mxu0 %v108_v0  ;;  %v106_v2 = vld [vmem:[#allocation6 + $0x68] sm:$0xff]  ;;  %v105_v3 = vld [vmem:[#allocation6 + $0x60] sm:$0xff]  ;;  %v104_v5 = vld [vmem:[#allocation6 + $0x58] sm:$0xff]  ;;  %s452_s9 = sshll.u32 %s732_s3, 4  ;;  %vm444_vm5 = vcmask 0   ;;  %s453_s9 = int_to_ptr.vmem [resolvable:$true] %s452_s9 }
  0x33   :  { %520 = vmatpush3.msra.mxu0 %v108_v0  ;;  %v79_v4 = vld [vmem:[#allocation8] sm:$0xff]  ;;  %v103_v7 = vld [vmem:[#allocation6 + $0x50] sm:$0xff]  ;;  %v102_v8 = vld [vmem:[#allocation6 + $0x48] sm:$0xff]  ;;  %s698_s10 = scalar_lea.vmem %s453_s9, 16  ;;  %s702_s11 = scalar_lea.vmem %s453_s9, 32 }
  0x34   :  { %521 = vmatprep.subr.mxu0 %v107_v1  ;;  %v81_v6 = vmul.f32 0.003921569, %v79_v4  ;;  %v101_v9 = vld [vmem:[#allocation6 + $0x40] sm:$0xff]  ;;  %v100_v10 = vld [vmem:[#allocation6 + $0x38] sm:$0xff]  ;;  %v99_v11 = vld [vmem:[#allocation6 + $0x30] sm:$0xff]  ;;  %p699_p6 = scmp.ne.s32.totalorder %s453_s9, %s698_s10  ;;  %p703_p7 = scmp.lt.s32.totalorder %s453_s9, %s453_s9 }
  0x35   :  { %522 = vmatpush3.msra.mxu0 %v107_v1  ;;  %v98_v12 = vld [vmem:[#allocation6 + $0x28] sm:$0xff]  ;;  %v97_v13 = vld [vmem:[#allocation6 + $0x20] sm:$0xff]  ;;  %v96_v14 = vld [vmem:[#allocation6 + $0x18] sm:$0xff]  ;;  %p704_p8 = scmp.lt.s32.totalorder %s702_s11, %s698_s10 }
  0x36   :  { %523 = vmatprep.subr.mxu0 %v106_v2  ;;  %551 = vmatprep.mubr.f32.mxu0 %v81_v6  ;;  %v95_v15 = vld [vmem:[#allocation6 + $0x10] sm:$0xff]  ;;  %v94_v16 = vld [vmem:[#allocation6 + $0x8] sm:$0xff]  ;;  %v93_v19 = vld [vmem:[#allocation6] sm:$0xff]  ;;  %v87_v24 = vmul.f32 %v81_v6, %v81_v6 }
  0x37   :  { %524 = vmatpush3.msra.mxu0 %v106_v2  ;;  %v80_v17 = vld [vmem:[#allocation8 + $0x8] sm:$0xff]  ;;  %v83_v18 = vld [vmem:[#allocation9] sm:$0xff]  ;;  %v84_v22 = vld [vmem:[#allocation9 + $0x8] sm:$0xff]  ;;  %p705_p9 = por %p704_p8, %p703_p7 }
  0x38   :  { %525 = vmatprep.subr.mxu0 %v105_v3  ;;  %v82_v20 = vmul.f32 0.003921569, %v80_v17  ;;  %v85_v21 = vmul.f32 0.003921569, %v83_v18  ;;  %v86_v23 = vmul.f32 0.003921569, %v84_v22 }
  0x39   :  { %526 = vmatpush3.msra.mxu0 %v105_v3  ;;  %v224_v30 = vld [vmem:[#allocation3] sm:$0xff]  ;;  %v225_v41 = vld [vmem:[#allocation3 + $0x8] sm:$0xff]  ;;  %v226_v42 = vld [vmem:[#allocation3 + $0x10] sm:$0xff]  ;;  %p706_p10 = pnand %p705_p9, %p699_p6 }
  0x3a   :  { %527 = vmatprep.subr.mxu0 %v104_v5  ;;  %v88_v25 = vmul.f32 %v82_v20, %v82_v20  ;;  %v89_v26 = vmul.f32 %v85_v21, %v85_v21  ;;  %v90_v27 = vmul.f32 %v86_v23, %v86_v23  ;;  %v91_v28 = vmul.f32 %v85_v21, %v81_v6  ;;  %v227_v43 = vld [vmem:[#allocation3 + $0x18] sm:$0xff]  ;;  %v228_v44 = vld [vmem:[#allocation3 + $0x20] sm:$0xff]  ;;  %v229_v45 = vld [vmem:[#allocation3 + $0x28] sm:$0xff] }
  0x3b   :  { %528 = vmatpush3.msra.mxu0 %v104_v5  ;;  %v92_v29 = vmul.f32 %v86_v23, %v82_v20  ;;  %586 = vmatprep.mubr.msk.f32.mxu1 %vm234_vm0, %v224_v30  ;;  %v230_v46 = vld [vmem:[#allocation3 + $0x30] sm:$0xff]  ;;  %v231_v47 = vld [vmem:[#allocation3 + $0x38] sm:$0xff]  ;;  %v232_v48 = vld [vmem:[#allocation3 + $0x40] sm:$0xff] }
  0x3c   :  { %529 = vmatprep.subr.mxu0 %v103_v7  ;;  %v233_v49 = vld [vmem:[#allocation3 + $0x48] sm:$0xff] }
  0x3d   :  { %530 = vmatpush3.msra.mxu0 %v103_v7 }
  0x3e   :  { %531 = vmatprep.subr.mxu0 %v102_v8 }
  0x3f   :  { %532 = vmatpush3.msra.mxu0 %v102_v8 }
  0x40   :  { %533 = vmatprep.subr.mxu0 %v101_v9 }
  0x41   :  { %534 = vmatpush3.msra.mxu0 %v101_v9 }
  0x42   :  { %535 = vmatprep.subr.mxu0 %v100_v10 }
  0x43   :  { %536 = vmatpush3.msra.mxu0 %v100_v10 }
  0x44   :  { %537 = vmatprep.subr.mxu0 %v99_v11 }
  0x45   :  { %538 = vmatpush3.msra.mxu0 %v99_v11 }
  0x46   :  { %539 = vmatprep.subr.mxu0 %v98_v12 }
  0x47   :  { %540 = vmatpush3.msra.mxu0 %v98_v12 }
  0x48   :  { %541 = vmatprep.subr.mxu0 %v97_v13 }
  0x49   :  { %542 = vmatpush3.msra.mxu0 %v97_v13 }
  0x4a   :  { %543 = vmatprep.subr.mxu0 %v96_v14 }
  0x4b   :  { %544 = vmatpush3.msra.mxu0 %v96_v14 }
  0x4c   :  { %545 = vmatprep.subr.mxu0 %v95_v15 }
  0x4d   :  { %546 = vmatpush3.msra.mxu0 %v95_v15 }
  0x4e   :  { %547 = vmatprep.subr.mxu0 %v94_v16 }
  0x4f   :  { %548 = vmatpush3.msra.mxu0 %v94_v16 }
  0x50   :  { %549 = vmatprep.subr.mxu0 %v93_v19 }
  0x51   :  { %550 = vmatpush3.msra.mxu0 %v93_v19 }
  0x52   :  { %552 = vmatmul.mubr.f32.vlgmr.msra.gmra.mxu0 %v82_v20 }
  0x53   :  { %554 = vmatprep.mubr.f32.mxu0 %v85_v21 }
  0x56   :  { %555 = vmatmul.mubr.f32.gmra.mxu0 %v86_v23 }
  0x57   :  { %557 = vmatprep.mubr.f32.mxu0 %v87_v24 }
  0x5a   :  { %558 = vmatmul.mubr.f32.gmra.mxu0 %v88_v25 }
  0x5b   :  { %560 = vmatprep.mubr.f32.mxu0 %v89_v26 }
  0x5e   :  { %561 = vmatmul.mubr.f32.gmra.mxu0 %v90_v27 }
  0x5f   :  { %563 = vmatprep.mubr.f32.mxu0 %v91_v28 }
  0x62   :  { %564 = vmatmul.mubr.f32.gmra.mxu0 %v92_v29 }
 0x112   :  { %v553_v31 = vpop.f32.mrf.mxu0 }
 0x114   :  { %v175_v32 = vpop.f32.mrf.mxu0 }
 0x116   :  { %v556_v33 = vpop.f32.mrf.mxu0 }
 0x118   :  { %v185_v34 = vpop.f32.mrf.mxu0 }
 0x11a   :  { %v559_v35 = vpop.f32.mrf.mxu0 }
 0x11c   :  { %v195_v36 = vpop.f32.mrf.mxu0 }
 0x11e   :  { %v562_v37 = vpop.f32.mrf.mxu0 }
 0x120   :  { %v205_v38 = vpop.f32.mrf.mxu0 }
 0x122   :  { %v565_v39 = vpop.f32.mrf.mxu0 }
 0x123   :  { %566 = vmatprep.subr.mxu1 %v565_v39 }
 0x124   :  { %v215_v40 = vpop.f32.mrf.mxu0  ;;  %567 = vmatpush3.msra.mxu1 %v565_v39 }
 0x125   :  { %568 = vmatprep.subr.mxu1 %v215_v40 }
 0x126   :  { %569 = vmatpush3.msra.mxu1 %v215_v40 }
 0x127   :  { %570 = vmatprep.subr.mxu1 %v562_v37 }
 0x128   :  { %571 = vmatpush3.msra.mxu1 %v562_v37 }
 0x129   :  { %572 = vmatprep.subr.mxu1 %v205_v38 }
 0x12a   :  { %573 = vmatpush3.msra.mxu1 %v205_v38 }
 0x12b   :  { %574 = vmatprep.subr.mxu1 %v559_v35 }
 0x12c   :  { %575 = vmatpush3.msra.mxu1 %v559_v35 }
 0x12d   :  { %576 = vmatprep.subr.mxu1 %v195_v36 }
 0x12e   :  { %577 = vmatpush3.msra.mxu1 %v195_v36 }
 0x12f   :  { %578 = vmatprep.subr.mxu1 %v556_v33 }
 0x130   :  { %579 = vmatpush3.msra.mxu1 %v556_v33 }
 0x131   :  { %580 = vmatprep.subr.mxu1 %v185_v34 }
 0x132   :  { %581 = vmatpush3.msra.mxu1 %v185_v34 }
 0x133   :  { %582 = vmatprep.subr.mxu1 %v553_v31 }
 0x134   :  { %583 = vmatpush3.msra.mxu1 %v553_v31 }
 0x135   :  { %584 = vmatprep.subr.mxu1 %v175_v32 }
 0x136   :  { %585 = vmatpush3.msra.mxu1 %v175_v32 }
 0x137   :  { %587 = vmatmul.mubr.msk.f32.vlgmr.msra.gmra.mxu1 %vm234_vm0, %v225_v41 }
 0x138   :  { %589 = vmatprep.mubr.msk.f32.mxu1 %vm234_vm0, %v226_v42 }
 0x13b   :  { %590 = vmatmul.mubr.msk.f32.gmra.mxu1 %vm234_vm0, %v227_v43 }
 0x13c   :  { %592 = vmatprep.mubr.msk.f32.mxu1 %vm234_vm0, %v228_v44 }
 0x13f   :  { %593 = vmatmul.mubr.msk.f32.gmra.mxu1 %vm234_vm0, %v229_v45 }
 0x140   :  { %595 = vmatprep.mubr.msk.f32.mxu1 %vm234_vm0, %v230_v46 }
 0x143   :  { %596 = vmatmul.mubr.msk.f32.gmra.mxu1 %vm234_vm0, %v231_v47 }
 0x144   :  { %598 = vmatprep.mubr.msk.f32.mxu1 %vm234_vm0, %v232_v48 }
 0x147   :  { %599 = vmatmul.mubr.msk.f32.gmra.mxu1 %vm234_vm0, %v233_v49 }
 0x1f7   :  { %v588_v50 = vpop.f32.mrf.mxu1 }
 0x1f8   :  { %v381_v55 = vmul.f32 %v588_v50, %v588_v50 }
 0x1f9   :  { %v331_v51 = vpop.f32.mrf.mxu1 }
 0x1fa   :  { %v380_v57 = vmul.f32 %v331_v51, %v331_v51 }
 0x1fb   :  { %v591_v52 = vpop.f32.mrf.mxu1 }
 0x1fc   :  { %v385_v58 = vmul.f32 %v591_v52, %v591_v52  ;;  %v411_v22 = vmul.f32 %v591_v52, %v588_v50 }
 0x1fd   :  { %v341_v53 = vpop.f32.mrf.mxu1 }
 0x1fe   :  { %v384_v61 = vmul.f32 %v341_v53, %v341_v53  ;;  %v410_v23 = vmul.f32 %v341_v53, %v331_v51 }
 0x1ff   :  { %v594_v54 = vpop.f32.mrf.mxu1 }
 0x200   :  { %v383_v59 = vsub.f32 %v594_v54, %v381_v55 }
 0x201   :  { %v351_v56 = vpop.f32.mrf.mxu1 }
 0x202   :  { %v382_v62 = vsub.f32 %v351_v56, %v380_v57  ;;  %v389_v1 = vadd.f32 1e-05, %v383_v59 }
 0x203   :  { %v597_v60 = vpop.f32.mrf.mxu1 }
 0x204   :  { %v387_v63 = vsub.f32 %v597_v60, %v385_v58  ;;  %v388_v4 = vadd.f32 1e-05, %v382_v62 }
 0x205   :  { %v361_v0 = vpop.f32.mrf.mxu1 }
 0x206   :  { %v391_v2 = vadd.f32 1e-05, %v387_v63  ;;  %v386_v3 = vsub.f32 %v361_v0, %v384_v61 }
 0x207   :  { %v600_v20 = vpop.f32.mrf.mxu1 }
 0x208   :  { %v393_v5 = vmul.f32 %v391_v2, %v389_v1  ;;  %v390_v6 = vadd.f32 1e-05, %v386_v3  ;;  %v413_v25 = vsub.f32 %v600_v20, %v411_v22 }
 0x209   :  { %v371_v21 = vpop.f32.mrf.mxu1 }
 0x20a   :  { %610 = vrsqrt.f32 %v393_v5  ;;  %v392_v7 = vmul.f32 %v390_v6, %v388_v4  ;;  %vm403_vm1 = vcmp.eq.f32.partialorder %v393_v5, inf  ;;  %v406_v11 = vand.u32 2147483648, %v393_v5 }
 0x20b   :  { %vm405_vm2 = vcmp.eq.f32.partialorder %v393_v5, 0.0  ;;  %v412_v26 = vsub.f32 %v371_v21, %v410_v23 }
 0x20c   :  { %612 = vrsqrt.f32 %v392_v7  ;;  %vm396_vm3 = vcmp.eq.f32.partialorder %v392_v7, inf  ;;  %v399_v14 = vand.u32 2147483648, %v392_v7  ;;  %vm398_vm4 = vcmp.eq.f32.partialorder %v392_v7, 0.0 }
 0x217   :  { %v611_v8 = vpop.eup %610 }
 0x218   :  { %v402_v9 = vmul.f32 %v611_v8, %v393_v5 }
 0x219   :  { %v613_v10 = vpop.eup %612 }
 0x21a   :  { %v395_v12 = vmul.f32 %v613_v10, %v392_v7  ;;  %v404_v13 = vsel %vm403_vm1, %v393_v5, %v402_v9 }
 0x21b   :  { %v407_v15 = vsel %vm405_vm2, %v406_v11, %v404_v13 }
 0x21c   :  { %v397_v16 = vsel %vm396_vm3, %v392_v7, %v395_v12  ;;  %v409_v17 = vadd.f32 1e-05, %v407_v15 }
 0x21d   :  { %v400_v18 = vsel %vm398_vm4, %v399_v14, %v397_v16 }
 0x21e   :  { %v408_v19 = vadd.f32 1e-05, %v400_v18  ;;  %614 = vrcp.f32 %v409_v17 }
 0x220   :  { %616 = vrcp.f32 %v408_v19 }
 0x22b   :  { %v615_v24 = vpop.eup %614 }
 0x22c   :  { %v417_v29 = vmul.f32 %v615_v24, %v413_v25 }
 0x22d   :  { %v617_v27 = vpop.eup %616 }
 0x22e   :  { %v415_v28 = vmul.f32 %v617_v27, %v412_v26 }
 0x230   :  { %v429_v30 = vadd.f32 %v417_v29, %v415_v28 }
 0x232   :  { %430 = vadd.xlane.f32.xlu0 %v429_v30 }
 0x2bb   :  { %v431_v31 = vpop.xlane.xlu0 %430 }
 0x2bc   :  { %v432_v32 = vrot.slane %v431_v31, 4 }
 0x2be   :  { %v433_v33 = vadd.f32 %v432_v32, %v431_v31 }
 0x2c0   :  { %v434_v34 = vrot.slane %v433_v33, 2 }
 0x2c2   :  { %v435_v35 = vadd.f32 %v434_v34, %v433_v33 }
 0x2c4   :  { %v436_v36 = vrot.slane %v435_v35, 1 }
 0x2c6   :  { %v437_v37 = vadd.f32 %v436_v36, %v435_v35 }
 0x2c8   :  { %601 = vpush %v437_v37 }
 0x2f9   :  { %s602_s2 = spop %601 }
 0x2fa   :  { %v439_v38 = vstv %s602_s2 }
 0x2fb   :  { %v440_v39 = vmul.f32 0.00048828125, %v439_v38 }
 0x2fd   :  { %v441_v40 = vsub.f32 0.0, %v440_v39 }
 0x2ff   :  { %v442_v41 = vadd.f32 1.0, %v441_v40 }
 0x301   :  { %v443_v42 = vmul.f32 0.5, %v442_v41 }
 0x303   :  { %445 = vst.msk [vmem:[#allocation11] sm:$0x1] %vm444_vm5, %v443_v42 }
 0x304   :  { %709 = shalt.err (!%p706_p10)
}
 0x305   :  { %455 = dma.vmem_to_hbm [thread:$0]  %s453_s9, 16, %s799_s4, [#allocation5]  }
 0x306   :  { %724 = dma.done.wait [#allocation5], 16  }
 0x307   :  { %725 = vsyncadd [#allocation5], 4294967280 }
 0x308   :  { %459 = vsyncpa [#allocation4], 1 }
 0x309   :  { %460 = vsyncpa [#allocation7], 1 }
 0x30a   :  { %461 = vsyncpa [#allocation10], 1 }
 0x30b   :  { %462 = vsyncpa [#allocation5], 1 }

</bundles_post_ra>
